<compile_context>
chip_gen: v5e
topology: v5e:2x2
jax: 0.10.0
libtpu: 0.0.40
codegen_flags: <defaults>
</compile_context>

<pallas_src>
import functools

import jax
import jax.numpy as jnp
from jax.experimental import pallas as pl
from jax.experimental.pallas import tpu as pltpu

LANE = 128
SUBLANE = 8


def _pool_linear_kernel(x_ref, w_ref, b_ref, o_ref, *, inv_hw):
    # x_ref: (TB, C, HW)  native input dtype (f32)
    # w_ref: (C, TN)      compute dtype (bf16), un-folded weight.T, class-padded
    # b_ref: (1, TN)      float32 padded bias
    # o_ref: (TB, TN)     float32
    x = x_ref[...].astype(jnp.float32)              # cast in-register (VPU slot)
    pooled = jnp.sum(x, axis=-1) * inv_hw           # 7x7 mean in f32 -> (TB, C)
    acc = jnp.dot(pooled.astype(w_ref.dtype), w_ref[...],
                  preferred_element_type=jnp.float32)
    o_ref[...] = acc + b_ref[...]


def prepare_classifier_params(weight, bias=None, *, compute_dtype=jnp.bfloat16):
    """Build the kernel-side weight/bias ONCE (at model init, not per call).

    weight: (num_classes, C)  -- PyTorch nn.Linear layout
    bias:   (num_classes,) or None (classifier_config.bias == False)
    Returns (w_padded: (C, Np) compute_dtype, b_padded: (1, Np) f32), Np = 128-multiple.
    """
    num_classes, _ = weight.shape
    n_pad = pl.cdiv(num_classes, LANE) * LANE
    w_t = weight.T.astype(compute_dtype)                       # (C, N)
    if n_pad != num_classes:
        w_t = jnp.pad(w_t, ((0, 0), (0, n_pad - num_classes)))
    if bias is None:
        b2 = jnp.zeros((1, n_pad), jnp.float32)
    else:
        b2 = jnp.pad(bias.astype(jnp.float32), (0, n_pad - num_classes)).reshape(1, n_pad)
    return w_t, b2


def classification_forward(x_nchw, w_padded, b_padded, num_classes, *,
                           block_b=128, vmem_limit_bytes=48 * 1024 * 1024):
    """Fused AvgPool2d((7,7)) -> Linear. `w_padded`/`b_padded` from prepare_classifier_params."""
    B, C, H, W = x_nchw.shape
    assert (H, W) == (7, 7), "AvgPool2d((7,7), padding=0) expects 7x7 spatial input"
    HW = H * W
    c_w, n_pad = w_padded.shape
    assert c_w == C, "weight channel dim must match x channels"

    # Free, contiguous reshape; no dtype cast / no pad pass over x.
    x3 = x_nchw.reshape(B, C, HW)

    # Batch tile: multiple of 8 sublanes.  Ragged last tile is masked by Pallas
    # (leading-dim partial block), so no jnp.pad over x is needed.
    if B <= SUBLANE:
        tb = B
    else:
        tb = max(SUBLANE, (min(block_b, B) // SUBLANE) * SUBLANE)
    nb = pl.cdiv(B, tb)

    # Single batch tile -> split classes into 128-wide blocks so both v7x
    # TensorCores get a shard; otherwise keep one lane-dense class block.
    tn = LANE if (nb == 1 and n_pad > LANE) else n_pad
    nj = n_pad // tn

    kernel = functools.partial(_pool_linear_kernel, inv_hw=1.0 / float(HW))

    out = pl.pallas_call(
        kernel,
        out_shape=jax.ShapeDtypeStruct((B, n_pad), jnp.float32),
        grid_spec=pltpu.PrefetchScalarGridSpec(
            num_scalar_prefetch=0,
            grid=(nb, nj),
            in_specs=[
                pl.BlockSpec((tb, C, HW), lambda b, j: (b, 0, 0)),  # x tile: streamed over batch
                pl.BlockSpec((C, tn), lambda b, j: (0, j)),          # weight: 128 KB, resident
                pl.BlockSpec((1, tn), lambda b, j: (0, j)),          # bias
            ],
            out_specs=pl.BlockSpec((tb, tn), lambda b, j: (b, j)),
        ),
        compiler_params=pltpu.CompilerParams(
            dimension_semantics=("parallel", "parallel"),
            vmem_limit_bytes=vmem_limit_bytes,
        ),
    )(x3, w_padded, b_padded)

    out = out[:, :num_classes]
    # Mirror the module's trailing .squeeze() (drops batch dim iff B == 1).
    return jnp.squeeze(out)


def classification_model(x_nchw, weight, bias=None, **kwargs):
    """Convenience one-shot wrapper (demo/tests).  In a real model, call
    prepare_classifier_params once at init and reuse the result per step."""
    w_p, b_p = prepare_classifier_params(weight, bias)
    return classification_forward(x_nchw, w_p, b_p, weight.shape[0], **kwargs)


if __name__ == "__main__":
    # Module defaults: in_channels=256, num_classes=200; AvgPool((7,7)) implies 7x7 input.
    B, C, H, W = 2, 256, 7, 7
    num_classes = 200

    key = jax.random.PRNGKey(0)
    kx, kw, kb = jax.random.split(key, 3)
    x = jax.random.normal(kx, (B, C, H, W), dtype=jnp.float32)
    bound = 1.0 / jnp.sqrt(jnp.float32(C))
    weight = jax.random.uniform(kw, (num_classes, C), jnp.float32, -bound, bound)
    bias = jax.random.uniform(kb, (num_classes,), jnp.float32, -bound, bound)

    # Params built once (init-time), reused across calls.
    w_p, b_p = prepare_classifier_params(weight, bias)

    out = classification_forward(x, w_p, b_p, num_classes)
    jax.block_until_ready(out)

    ref = jnp.mean(x, axis=(2, 3)) @ weight.T + bias
    assert out.shape == (B, num_classes), out.shape
    assert jnp.allclose(out, ref, atol=1e-2, rtol=1e-2), "mismatch vs reference (B=2)"

    # Multi-tile + ragged-last-tile path (B=20, TB=8 -> tiles 8,8,4; last tile masked).
    B2 = 20
    x_big = jax.random.normal(jax.random.PRNGKey(1), (B2, C, H, W), dtype=jnp.float32)
    out_big = classification_forward(x_big, w_p, b_p, num_classes, block_b=8)
    jax.block_until_ready(out_big)
    ref_big = jnp.mean(x_big, axis=(2, 3)) @ weight.T + bias
    assert out_big.shape == (B2, num_classes), out_big.shape
    assert jnp.allclose(out_big, ref_big, atol=1e-2, rtol=1e-2), "mismatch vs reference (B=20)"

    # bias=False path of the module (classifier_config.bias == False).
    out_nb = classification_model(x, weight, None)
    jax.block_until_ready(out_nb)
    ref_nb = jnp.mean(x, axis=(2, 3)) @ weight.T
    assert jnp.allclose(out_nb, ref_nb, atol=1e-2, rtol=1e-2), "mismatch vs reference (no bias)"

    print("KERNEL_OK")
</pallas_src>

<mosaic_0001>
module attributes {stable_mosaic.version = 11 : i64} {
  func.func @_pool_linear_kernel(%arg0: i32, %arg1: i32, %arg2: memref<2x256x49xf32, #tpu.memory_space<vmem>>, %arg3: memref<256x128xbf16, #tpu.memory_space<vmem>>, %arg4: memref<1x128xf32, #tpu.memory_space<vmem>>, %arg5: memref<2x128xf32, #tpu.memory_space<vmem>>) attributes {dimension_semantics = [#tpu.dimension_semantics<parallel>, #tpu.dimension_semantics<parallel>], iteration_bounds = array<i64: 1, 2>, scalar_prefetch = 0 : i64, scratch_operands = 0 : i64, tpu.core_type = #tpu.core_type<tc>, window_params = [{transform_indices = @transform_0, window_bounds = array<i64: 2, 256, 49>}, {transform_indices = @transform_1, window_bounds = array<i64: 256, 128>}, {transform_indices = @transform_2, window_bounds = array<i64: 1, 128>}, {transform_indices = @transform_3, window_bounds = array<i64: 2, 128>}]} {
    %c0 = arith.constant 0 : index
    %c0_0 = arith.constant 0 : index
    %c0_1 = arith.constant 0 : index
    %0 = vector.load %arg2[%c0, %c0_0, %c0_1] : memref<2x256x49xf32, #tpu.memory_space<vmem>>, vector<2x256x49xf32>
    %cst = arith.constant dense<0.000000e+00> : vector<2x256xf32>
    %1 = vector.multi_reduction <add>, %0, %cst [2] : vector<2x256x49xf32> to vector<2x256xf32>
    %cst_2 = arith.constant 0.0204081628 : f32
    %2 = vector.broadcast %cst_2 : f32 to vector<2x256xf32>
    %3 = arith.mulf %1, %2 : vector<2x256xf32>
    %4 = arith.truncf %3 : vector<2x256xf32> to vector<2x256xbf16>
    %c0_3 = arith.constant 0 : index
    %c0_4 = arith.constant 0 : index
    %5 = vector.load %arg3[%c0_3, %c0_4] : memref<256x128xbf16, #tpu.memory_space<vmem>>, vector<256x128xbf16>
    %cst_5 = arith.constant dense<0.000000e+00> : vector<2x128xf32>
    %6 = tpu.matmul %4, %5, %cst_5 {dimension_numbers = #tpu.dot_dimension_numbers<[1], [0], [0], [1], [0, 0, 1, 1], [], []>} : vector<2x256xbf16>, vector<256x128xbf16>, vector<2x128xf32> -> vector<2x128xf32>
    %c0_6 = arith.constant 0 : index
    %c0_7 = arith.constant 0 : index
    %7 = vector.load %arg4[%c0_6, %c0_7] : memref<1x128xf32, #tpu.memory_space<vmem>>, vector<1x128xf32>
    %8 = vector.broadcast %7 : vector<1x128xf32> to vector<2x128xf32>
    %9 = arith.addf %6, %8 : vector<2x128xf32>
    %c0_8 = arith.constant 0 : index
    %c0_9 = arith.constant 0 : index
    %10 = vector.load %arg5[%c0_8, %c0_9] : memref<2x128xf32, #tpu.memory_space<vmem>>, vector<2x128xf32>
    tpu.vector_store %arg5[%c0_8, %c0_9], %9 {strides = array<i32>} : memref<2x128xf32, #tpu.memory_space<vmem>>, vector<2x128xf32>,
    return
  }
  func.func @transform_0(%arg0: i32, %arg1: i32) -> (i32, i32, i32) {
    %c0_i32 = arith.constant 0 : i32
    %c0_i32_0 = arith.constant 0 : i32
    %c0_i32_1 = arith.constant 0 : i32
    return %arg0, %c0_i32, %c0_i32_0 : i32, i32, i32
  }
  func.func @transform_1(%arg0: i32, %arg1: i32) -> (i32, i32) {
    %c0_i32 = arith.constant 0 : i32
    %c0_i32_0 = arith.constant 0 : i32
    return %c0_i32, %arg1 : i32, i32
  }
  func.func @transform_2(%arg0: i32, %arg1: i32) -> (i32, i32) {
    %c0_i32 = arith.constant 0 : i32
    %c0_i32_0 = arith.constant 0 : i32
    return %c0_i32, %arg1 : i32, i32
  }
  func.func @transform_3(%arg0: i32, %arg1: i32) -> (i32, i32) {
    %c0_i32 = arith.constant 0 : i32
    return %arg0, %arg1 : i32, i32
  }
}

</mosaic_0001>

<bundles_post_ra>
// kernel: tpu_custom_call.1
= control target key start
LH: loop header
LB: loop body
LE: loop exit
PB: predicated region body
PF: predicated region fallthrough
CT: control target
= control target key end

     0   :  { %8 = vsyncpa [#allocation4], 0  ;;  %s2185_s0 = inlined_call_operand.vmem [shape: f32[2,256,49], index: 0, kind: input, shape index: {}]   ;;  %s2186_s1 = inlined_call_operand.vmem [shape: bf16[256,256], index: 1, kind: input, shape index: {}]   ;;  %s2187_s2 = inlined_call_operand.vmem [shape: f32[1,256], index: 2, kind: input, shape index: {}]   ;;  %s2188_s3 = inlined_call_operand.hbm [shape: f32[2,256], index: 3, kind: output, shape index: {}]  }
   0x1   :  { %10 = vsyncpa [#allocation4 + $0x1], 0  ;;  %s1527_s12 = smov 0   ;;  %s1529_s13 = smov 0  }
   0x2   :  { %s1531_s14 = smov 0   ;;  %s1533_s15 = smov 0  }
   0x3   :  { %s1535_s16 = smov 0   ;;  %s1537_s17 = smov 0  }
   0x4 LB: > { %s1277_s18 = sadd.s32 4294967295, %s1505_s17   ;;  %s1278_s19 = sadd.s32 4294967294, %s1505_s17   ;;  %s1505_s17 = sphi %s1537_s17, %s16_s17   ;;  %s1501_s16 = sphi %s1535_s16, %s2195_s16   ;;  %s1497_s15 = sphi %s1533_s15, %s2194_s15   ;;  %s1493_s14 = sphi %s1531_s14, %s2193_s14   ;;  %s1489_s13 = sphi %s1529_s13, %s2192_s13   ;;  %s1485_s12 = sphi %s1527_s12, %s2191_s12  }
   0x5   : > { %s25_s20 = sadd.s32 1, %s1501_s16  ;;  %s61_s21 = sadd.s32 1, %s1493_s14 }
   0x6   : > { %p26_p0 = scmp.ge.s32.totalorder %s25_s20, 2  ;;  %p68_p1 = scmp.ne.s32.totalorder %s1493_s14, %s1489_s13 }
   0x7   : > { %p69_p2 = scmp.eq.s32.totalorder %s1505_s17, 0  ;;  %p126_p3 = scmp.eq.s32.totalorder %s1277_s18, 1 }
   0x8   : > { %s2197_s20 = smov (%p26_p0, %s25_s20), 0  ;;  %p131_p6 = scmp.ne.s32.totalorder %s1489_s13, %s1485_s12 }
   0x9   : > { %p70_p4 = por %p69_p2, %p68_p1  ;;  %p1566_p5 = por %p126_p3, %p68_p1 }
   0xa   : > { %s58_s23 = ssub.s32 %s1501_s16, %s2197_s20  ;;  %p132_p8 = scmp.eq.s32.totalorder %s1278_s19, 1 }
   0xb   : > { %p59_p7 = scmp.eq.s32.totalorder %s58_s23, 0  ;;  %p1281_p10 = scmp.ge.s32.totalorder %s1505_s17, 2 }
   0xc   : > { %p1577_p9 = por %p132_p8, %p131_p6 }
   0xd   : > { %s1575_s24 = scalar_select %p59_p7, %s1493_s14, %s61_s21  }
   0xe   : > { %158 = sbr.rel (%p1281_p10) target bundleno = 55 (0x37), region = 20 }
  0x13   : > { %161 = sbr.rel (!%p70_p4) target bundleno = 55 (0x37), region = 24  ;;  %s163_s26 = sand.u32 (%p70_p4), 1, %s1493_s14  }
  0x14   : > { %s1283_s27 = sshll.u32 (%p70_p4), %s1501_s16, 2  ;;  %s1282_s28 = sshll.u32 (%p70_p4), %s163_s26, 7 }
  0x15   : > { %s1589_s4 = scalar_lea.vmem (%p70_p4), %s2186_s1, %s1283_s27  ;;  %s1593_s5 = scalar_lea.vmem (%p70_p4), [#allocation2], %s1282_s28 }
  0x16   : > { %v184_v0 = vld [vmem:[%s1589_s4] sm:$0xf] (%p70_p4)  ;;  %v186_v1 = vld [vmem:[%s1589_s4 + $0x8] sm:$0xf] (%p70_p4)  ;;  %v188_v2 = vld [vmem:[%s1589_s4 + $0x10] sm:$0xf] (%p70_p4) }
  0x17   : > { %185 = vst [vmem:[%s1593_s5] sm:$0xf] (%p70_p4), %v184_v0  ;;  %v190_v3 = vld [vmem:[%s1589_s4 + $0x18] sm:$0xf] (%p70_p4)  ;;  %v192_v4 = vld [vmem:[%s1589_s4 + $0x20] sm:$0xf] (%p70_p4) }
  0x18   : > { %187 = vst [vmem:[%s1593_s5 + $0x4] sm:$0xf] %v186_v1  ;;  %v194_v5 = vld [vmem:[%s1589_s4 + $0x28] sm:$0xf]  ;;  %v196_v6 = vld [vmem:[%s1589_s4 + $0x30] sm:$0xf] }
  0x19   : > { %189 = vst [vmem:[%s1593_s5 + $0x8] sm:$0xf] %v188_v2  ;;  %v198_v7 = vld [vmem:[%s1589_s4 + $0x38] sm:$0xf]  ;;  %v200_v8 = vld [vmem:[%s1589_s4 + $0x40] sm:$0xf] }
  0x1a   : > { %191 = vst [vmem:[%s1593_s5 + $0xc] sm:$0xf] %v190_v3  ;;  %v202_v9 = vld [vmem:[%s1589_s4 + $0x48] sm:$0xf]  ;;  %v204_v10 = vld [vmem:[%s1589_s4 + $0x50] sm:$0xf] }
  0x1b   : > { %193 = vst [vmem:[%s1593_s5 + $0x10] sm:$0xf] %v192_v4  ;;  %v206_v11 = vld [vmem:[%s1589_s4 + $0x58] sm:$0xf]  ;;  %v208_v12 = vld [vmem:[%s1589_s4 + $0x60] sm:$0xf] }
  0x1c   : > { %195 = vst [vmem:[%s1593_s5 + $0x14] sm:$0xf] %v194_v5  ;;  %v210_v13 = vld [vmem:[%s1589_s4 + $0x68] sm:$0xf]  ;;  %v212_v14 = vld [vmem:[%s1589_s4 + $0x70] sm:$0xf] }
  0x1d   : > { %197 = vst [vmem:[%s1593_s5 + $0x18] sm:$0xf] %v196_v6  ;;  %v214_v15 = vld [vmem:[%s1589_s4 + $0x78] sm:$0xf]  ;;  %v216_v16 = vld [vmem:[%s1589_s4 + $0x80] sm:$0xf] }
  0x1e   : > { %199 = vst [vmem:[%s1593_s5 + $0x1c] sm:$0xf] %v198_v7  ;;  %v218_v17 = vld [vmem:[%s1589_s4 + $0x88] sm:$0xf]  ;;  %v220_v18 = vld [vmem:[%s1589_s4 + $0x90] sm:$0xf] }
  0x1f   : > { %201 = vst [vmem:[%s1593_s5 + $0x20] sm:$0xf] %v200_v8  ;;  %v222_v19 = vld [vmem:[%s1589_s4 + $0x98] sm:$0xf]  ;;  %v224_v20 = vld [vmem:[%s1589_s4 + $0xa0] sm:$0xf] }
  0x20   : > { %203 = vst [vmem:[%s1593_s5 + $0x24] sm:$0xf] %v202_v9  ;;  %v226_v21 = vld [vmem:[%s1589_s4 + $0xa8] sm:$0xf]  ;;  %v228_v22 = vld [vmem:[%s1589_s4 + $0xb0] sm:$0xf] }
  0x21   : > { %205 = vst [vmem:[%s1593_s5 + $0x28] sm:$0xf] %v204_v10  ;;  %v230_v23 = vld [vmem:[%s1589_s4 + $0xb8] sm:$0xf]  ;;  %v232_v24 = vld [vmem:[%s1589_s4 + $0xc0] sm:$0xf] }
  0x22   : > { %207 = vst [vmem:[%s1593_s5 + $0x2c] sm:$0xf] %v206_v11  ;;  %v234_v25 = vld [vmem:[%s1589_s4 + $0xc8] sm:$0xf]  ;;  %v236_v26 = vld [vmem:[%s1589_s4 + $0xd0] sm:$0xf] }
  0x23   : > { %209 = vst [vmem:[%s1593_s5 + $0x30] sm:$0xf] %v208_v12  ;;  %v238_v27 = vld [vmem:[%s1589_s4 + $0xd8] sm:$0xf]  ;;  %v240_v28 = vld [vmem:[%s1589_s4 + $0xe0] sm:$0xf] }
  0x24   : > { %211 = vst [vmem:[%s1593_s5 + $0x34] sm:$0xf] %v210_v13  ;;  %v242_v29 = vld [vmem:[%s1589_s4 + $0xe8] sm:$0xf]  ;;  %v244_v30 = vld [vmem:[%s1589_s4 + $0xf0] sm:$0xf] }
  0x25   : > { %213 = vst [vmem:[%s1593_s5 + $0x38] sm:$0xf] %v212_v14  ;;  %v246_v31 = vld [vmem:[%s1589_s4 + $0xf8] sm:$0xf] }
  0x26   : > { %215 = vst [vmem:[%s1593_s5 + $0x3c] sm:$0xf] %v214_v15 }
  0x27   : > { %217 = vst [vmem:[%s1593_s5 + $0x40] sm:$0xf] %v216_v16 }
  0x28   : > { %219 = vst [vmem:[%s1593_s5 + $0x44] sm:$0xf] %v218_v17 }
  0x29   : > { %221 = vst [vmem:[%s1593_s5 + $0x48] sm:$0xf] %v220_v18 }
  0x2a   : > { %223 = vst [vmem:[%s1593_s5 + $0x4c] sm:$0xf] %v222_v19 }
  0x2b   : > { %225 = vst [vmem:[%s1593_s5 + $0x50] sm:$0xf] %v224_v20 }
  0x2c   : > { %227 = vst [vmem:[%s1593_s5 + $0x54] sm:$0xf] %v226_v21 }
  0x2d   : > { %229 = vst [vmem:[%s1593_s5 + $0x58] sm:$0xf] %v228_v22 }
  0x2e   : > { %231 = vst [vmem:[%s1593_s5 + $0x5c] sm:$0xf] %v230_v23 }
  0x2f   : > { %233 = vst [vmem:[%s1593_s5 + $0x60] sm:$0xf] %v232_v24 }
  0x30   : > { %235 = vst [vmem:[%s1593_s5 + $0x64] sm:$0xf] %v234_v25 }
  0x31   : > { %237 = vst [vmem:[%s1593_s5 + $0x68] sm:$0xf] %v236_v26 }
  0x32   : > { %239 = vst [vmem:[%s1593_s5 + $0x6c] sm:$0xf] %v238_v27 }
  0x33   : > { %241 = vst [vmem:[%s1593_s5 + $0x70] sm:$0xf] %v240_v28 }
  0x34   : > { %243 = vst [vmem:[%s1593_s5 + $0x74] sm:$0xf] %v242_v29 }
  0x35   : > { %245 = vst [vmem:[%s1593_s5 + $0x78] sm:$0xf] %v244_v30 }
  0x36   : > { %247 = vst [vmem:[%s1593_s5 + $0x7c] sm:$0xf] %v246_v31 }
  0x37 PF: > { %p1284_p11 = scmp.ge.s32.totalorder %s1505_s17, 1  ;;  %p340_p12 = scmp.lt.s32.totalorder %s1505_s17, 3 }
  0x39   : > { %p341_p13 = pnand %p1284_p11, %p340_p12 }
  0x3a   : > { %p386_p0 = scmp.lt.s32.totalorder (!%p341_p13), %s1497_s15, 1  ;;  %s2025_s29 = sand.u32 (!%p341_p13), 1, %s1489_s13  }
  0x3b   : > { %344 = sbr.rel (%p341_p13) target bundleno = 499 (0x1f3), region = 69  ;;  %s1285_s30 = sshll.u32 (!%p341_p13), %s2025_s29, 7 }
  0x3c   : > { %s2028_s4 = scalar_lea.vmem (!%p341_p13), [#allocation2], %s1285_s30  ;;  %s1352_s5 = sshll.u32 (!%p341_p13), %s1497_s15, 1 }
  0x3d   : > { %s1286_s6 = sshll.u32 (!%p341_p13), %s2025_s29, 1  ;;  %s1173_s11 = scalar_lea.hbm (!%p341_p13), %s2188_s3, %s1352_s5 }
  0x3e   : > { %s378_s18 = scalar_lea.vmem (!%p341_p13), [#allocation3], %s1286_s6  ;;  %s1177_s21 = sshll.u32 (!%p341_p13), %s1173_s11, 4  ;;  %s1178_s21 = int_to_ptr.hbm [resolvable:$true] %s1177_s21 }
  0x3f   : > { %s1175_s19 = sshll.u32 (!%p341_p13), %s378_s18, 4  ;;  %s1441_s26 = sshra.s32 (!%p341_p13), %s1178_s21, 4  ;;  %s1176_s19 = int_to_ptr.vmem [resolvable:$true] %s1175_s19  ;;  %s1442_s26 = int_to_ptr.hbm [resolvable:$true] %s1441_s26 }
  0x40   : > { %v421_v32 = vld [vmem:[%s2185_s0 + $0x100] sm:$0xff]  ;;  %vm453_vm0 = vcmask 400384   ;;  %v422_v38 = vld [vmem:[%s2185_s0 + $0x108] sm:$0xff]  ;;  %v391_v45 = vld [vmem:[%s2185_s0 + $0x10] sm:$0xff]  ;;  %vm879_vm1 = vcmask 130112   ;;  %vm883_vm2 = vcmask 195712   ;;  %p1448_p4 = scmp.lt.s32.totalorder %s1442_s26, %s2188_s3 }
  0x41   : > { %v405_v33 = vld [vmem:[%s2185_s0 + $0x80] sm:$0xff]  ;;  %v550_v35 = vsel %vm453_vm0, %v421_v32, 0.0  ;;  %v406_v39 = vld [vmem:[%s2185_s0 + $0x88] sm:$0xff]  ;;  %v553_v41 = vsel %vm453_vm0, %v422_v38, 0.0  ;;  %v460_v48 = vsel %vm453_vm0, %v391_v45, 0.0  ;;  %v407_v50 = vld [vmem:[%s2185_s0 + $0x90] sm:$0xff] }
  0x42   : > { %v389_v34 = vld [vmem:[%s2185_s0] sm:$0xff]  ;;  %v502_v36 = vsel %vm453_vm0, %v405_v33, 0.0  ;;  %551 = vadd.xlane.f32.xlu2 %v550_v35  ;;  %v390_v40 = vld [vmem:[%s2185_s0 + $0x8] sm:$0xff]  ;;  %v505_v42 = vsel %vm453_vm0, %v406_v39, 0.0  ;;  %v408_v51 = vld [vmem:[%s2185_s0 + $0x98] sm:$0xff]  ;;  %v508_v53 = vsel %vm453_vm0, %v407_v50, 0.0 }
  0x43   : > { %v454_v37 = vsel %vm453_vm0, %v389_v34, 0.0  ;;  %503 = vadd.xlane.f32.xlu1 %v502_v36  ;;  %v457_v43 = vsel %vm453_vm0, %v390_v40, 0.0  ;;  %v438_v44 = vld [vmem:[%s2185_s0 + $0x188] sm:$0xff]  ;;  %v437_v46 = vld [vmem:[%s2185_s0 + $0x180] sm:$0xff]  ;;  %v392_v52 = vld [vmem:[%s2185_s0 + $0x18] sm:$0xff]  ;;  %v511_v54 = vsel %vm453_vm0, %v408_v51, 0.0 }
  0x44   : > { %455 = vadd.xlane.f32.xlu0 %v454_v37  ;;  %v601_v47 = vsel %vm453_vm0, %v438_v44, 0.0  ;;  %v598_v49 = vsel %vm453_vm0, %v437_v46, 0.0  ;;  %v463_v55 = vsel %vm453_vm0, %v392_v52, 0.0  ;;  %v424_v56 = vld [vmem:[%s2185_s0 + $0x118] sm:$0xff]  ;;  %v439_v57 = vld [vmem:[%s2185_s0 + $0x190] sm:$0xff]  ;;  %v393_v62 = vld [vmem:[%s2185_s0 + $0x20] sm:$0xff] }
  0x45   : > { %v423_v58 = vld [vmem:[%s2185_s0 + $0x110] sm:$0xff]  ;;  %v559_v59 = vsel %vm453_vm0, %v424_v56, 0.0  ;;  %v604_v60 = vsel %vm453_vm0, %v439_v57, 0.0  ;;  %v394_v63 = vld [vmem:[%s2185_s0 + $0x28] sm:$0xff]  ;;  %v440_v0 = vld [vmem:[%s2185_s0 + $0x198] sm:$0xff]  ;;  %v466_v1 = vsel %vm453_vm0, %v393_v62, 0.0 }
  0x46   : > { %v556_v61 = vsel %vm453_vm0, %v423_v58, 0.0  ;;  %v469_v2 = vsel %vm453_vm0, %v394_v63, 0.0  ;;  %v607_v3 = vsel %vm453_vm0, %v440_v0, 0.0  ;;  %v410_v4 = vld [vmem:[%s2185_s0 + $0xa8] sm:$0xff]  ;;  %v425_v5 = vld [vmem:[%s2185_s0 + $0x120] sm:$0xff]  ;;  %v396_v16 = vld [vmem:[%s2185_s0 + $0x38] sm:$0xff] }
  0x47   : > { %v409_v6 = vld [vmem:[%s2185_s0 + $0xa0] sm:$0xff]  ;;  %v517_v7 = vsel %vm453_vm0, %v410_v4, 0.0  ;;  %v562_v8 = vsel %vm453_vm0, %v425_v5, 0.0  ;;  %v442_v11 = vld [vmem:[%s2185_s0 + $0x1a8] sm:$0xff]  ;;  %v411_v17 = vld [vmem:[%s2185_s0 + $0xb0] sm:$0xff]  ;;  %v475_v19 = vsel %vm453_vm0, %v396_v16, 0.0 }
  0x48   : > { %v514_v9 = vsel %vm453_vm0, %v409_v6, 0.0  ;;  %v441_v10 = vld [vmem:[%s2185_s0 + $0x1a0] sm:$0xff]  ;;  %v426_v12 = vld [vmem:[%s2185_s0 + $0x128] sm:$0xff]  ;;  %v613_v14 = vsel %vm453_vm0, %v442_v11, 0.0  ;;  %v395_v18 = vld [vmem:[%s2185_s0 + $0x30] sm:$0xff]  ;;  %v520_v20 = vsel %vm453_vm0, %v411_v17, 0.0 }
  0x49   : > { %v610_v13 = vsel %vm453_vm0, %v441_v10, 0.0  ;;  %v565_v15 = vsel %vm453_vm0, %v426_v12, 0.0  ;;  %v472_v21 = vsel %vm453_vm0, %v395_v18, 0.0  ;;  %v427_v22 = vld [vmem:[%s2185_s0 + $0x130] sm:$0xff]  ;;  %v428_v23 = vld [vmem:[%s2185_s0 + $0x138] sm:$0xff]  ;;  %v397_v29 = vld [vmem:[%s2185_s0 + $0x40] sm:$0xff] }
  0x4a   : > { %554 = vadd.xlane.f32.xlu2 %v553_v41  ;;  %v412_v24 = vld [vmem:[%s2185_s0 + $0xb8] sm:$0xff]  ;;  %v568_v25 = vsel %vm453_vm0, %v427_v22, 0.0  ;;  %v571_v26 = vsel %vm453_vm0, %v428_v23, 0.0  ;;  %v443_v30 = vld [vmem:[%s2185_s0 + $0x1b0] sm:$0xff]  ;;  %v478_v32 = vsel %vm453_vm0, %v397_v29, 0.0  ;;  %v413_v34 = vld [vmem:[%s2185_s0 + $0xc0] sm:$0xff]  ;;  %v874_v23 = vlaneseq }
  0x4b   : > { %506 = vadd.xlane.f32.xlu1 %v505_v42  ;;  %v523_v27 = vsel %vm453_vm0, %v412_v24, 0.0  ;;  %v444_v28 = vld [vmem:[%s2185_s0 + $0x1b8] sm:$0xff]  ;;  %v616_v33 = vsel %vm453_vm0, %v443_v30, 0.0  ;;  %v414_v35 = vld [vmem:[%s2185_s0 + $0xc8] sm:$0xff]  ;;  %v526_v37 = vsel %vm453_vm0, %v413_v34, 0.0  ;;  %v445_v41 = vld [vmem:[%s2185_s0 + $0x1c0] sm:$0xff] }
  0x4c   : > { %458 = vadd.xlane.f32.xlu0 %v457_v43  ;;  %v619_v31 = vsel %vm453_vm0, %v444_v28, 0.0  ;;  %v398_v36 = vld [vmem:[%s2185_s0 + $0x48] sm:$0xff]  ;;  %v529_v38 = vsel %vm453_vm0, %v414_v35, 0.0  ;;  %v429_v42 = vld [vmem:[%s2185_s0 + $0x140] sm:$0xff]  ;;  %v622_v44 = vsel %vm453_vm0, %v445_v41, 0.0  ;;  %v399_v46 = vld [vmem:[%s2185_s0 + $0x50] sm:$0xff] }
  0x4d   : > { %v481_v39 = vsel %vm453_vm0, %v398_v36, 0.0  ;;  %v430_v40 = vld [vmem:[%s2185_s0 + $0x148] sm:$0xff]  ;;  %v574_v45 = vsel %vm453_vm0, %v429_v42, 0.0  ;;  %v416_v52 = vld [vmem:[%s2185_s0 + $0xd8] sm:$0xff]  ;;  %v447_v58 = vld [vmem:[%s2185_s0 + $0x1d0] sm:$0xff]  ;;  %vm887_vm3 = vcmask 261312  }
  0x4e   : > { %v577_v43 = vsel %vm453_vm0, %v430_v40, 0.0  ;;  %v432_v62 = vld [vmem:[%s2185_s0 + $0x158] sm:$0xff]  ;;  %v628_v0 = vsel %vm453_vm0, %v447_v58, 0.0  ;;  %v402_v5 = vld [vmem:[%s2185_s0 + $0x68] sm:$0xff]  ;;  %v417_v6 = vld [vmem:[%s2185_s0 + $0xe0] sm:$0xff]  ;;  %vm891_vm4 = vcmask 326912  }
  0x4f   : > { %v538_v16 = vsel %vm453_vm0, %v417_v6, 0.0  ;;  %v434_v22 = vld [vmem:[%s2185_s0 + $0x168] sm:$0xff]  ;;  %v403_v36 = vld [vmem:[%s2185_s0 + $0x70] sm:$0xff]  ;;  %vm895_vm5 = vcmask 392512   ;;  %s1976_s23 = scalar_select %p386_p0, %s1497_s15, 1  ;;  %vm899_vm6 = vcmask 458112  }
  0x50   : > { %v450_v35 = vld [vmem:[%s2185_s0 + $0x1e8] sm:$0xff]  ;;  %vm903_vm7 = vcmask 523712   ;;  %vm907_vm8 = vcmask 589312   ;;  %vm911_vm9 = vcmask 654912   ;;  %vm915_vm10 = vcmask 720512   ;;  %s1161_s15 = scalar_lea.sflag [#allocation4], %s2025_s29 }
  0x51   : > { %s388_s28 = scalar_lea.vmem %s2187_s2, %s1976_s23  ;;  %vm919_vm11 = vcmask 786112   ;;  %vm923_vm12 = vcmask 851712   ;;  %vm927_vm13 = vcmask 917312   ;;  %vm931_vm14 = vcmask 982912   ;;  %s1443_s23 = scalar_lea.hbm %s1442_s26, 2 }
  0x52   : > { %461 = vadd.xlane.f32.xlu2 %v460_v48  ;;  %v446_v48 = vld [vmem:[%s2185_s0 + $0x1c8] sm:$0xff]  ;;  %vm935_vm15 = vcmask 1048512   ;;  %p1444_p1 = scmp.ne.s32.totalorder %s1442_s26, %s1443_s23  ;;  %s1447_s30 = scalar_lea.hbm %s2188_s3, 4 }
  0x53   : > { %602 = vadd.xlane.f32.xlu1 %v601_v47  ;;  %v400_v47 = vld [vmem:[%s2185_s0 + $0x58] sm:$0xff]  ;;  %v625_v51 = vsel %vm453_vm0, %v446_v48, 0.0  ;;  %p1449_p6 = scmp.lt.s32.totalorder %s1447_s30, %s1443_s23 }
  0x54   : > { %599 = vadd.xlane.f32.xlu0 %v598_v49  ;;  %v484_v49 = vsel %vm453_vm0, %v399_v46, 0.0  ;;  %v487_v50 = vsel %vm453_vm0, %v400_v47, 0.0  ;;  %p1445_p2 = pnand %p1444_p1, %p1566_p5 }
  0x55   : > { %p1450_p7 = por %p1449_p6, %p1448_p4 }
  0x56   : > { %p1446_p3 = pneg %p1445_p2 }
  0x58   : > { %p1451_p8 = pnand %p1450_p7, %p1446_p3 }
  0x5a   : > { %512 = vadd.xlane.f32.xlu2 %v511_v54  ;;  %v415_v54 = vld [vmem:[%s2185_s0 + $0xd0] sm:$0xff] }
  0x5b   : > { %509 = vadd.xlane.f32.xlu1 %v508_v53  ;;  %v431_v53 = vld [vmem:[%s2185_s0 + $0x150] sm:$0xff]  ;;  %v532_v57 = vsel %vm453_vm0, %v415_v54, 0.0 }
  0x5c   : > { %464 = vadd.xlane.f32.xlu0 %v463_v55  ;;  %v535_v55 = vsel %vm453_vm0, %v416_v52, 0.0  ;;  %v580_v56 = vsel %vm453_vm0, %v431_v53, 0.0 }
  0x62   : > { %605 = vadd.xlane.f32.xlu2 %v604_v60 }
  0x63   : > { %560 = vadd.xlane.f32.xlu1 %v559_v59  ;;  %v448_v59 = vld [vmem:[%s2185_s0 + $0x1d8] sm:$0xff] }
  0x64   : > { %557 = vadd.xlane.f32.xlu0 %v556_v61 }
  0x6a   : > { %470 = vadd.xlane.f32.xlu2 %v469_v2  ;;  %v583_v2 = vsel %vm453_vm0, %v432_v62, 0.0 }
  0x6b   : > { %467 = vadd.xlane.f32.xlu1 %v466_v1  ;;  %v631_v1 = vsel %vm453_vm0, %v448_v59, 0.0 }
  0x6c   : > { %608 = vadd.xlane.f32.xlu0 %v607_v3 }
  0x72   : > { %563 = vadd.xlane.f32.xlu2 %v562_v8 }
  0x73   : > { %518 = vadd.xlane.f32.xlu1 %v517_v7 }
  0x74   : > { %515 = vadd.xlane.f32.xlu0 %v514_v9  ;;  %v401_v9 = vld [vmem:[%s2185_s0 + $0x60] sm:$0xff] }
  0x7a   : > { %614 = vadd.xlane.f32.xlu2 %v613_v14 }
  0x7b   : > { %611 = vadd.xlane.f32.xlu1 %v610_v13 }
  0x7c   : > { %566 = vadd.xlane.f32.xlu0 %v565_v15  ;;  %v493_v15 = vsel %vm453_vm0, %v402_v5, 0.0  ;;  %v420_v5 = vld [vmem:[%s2185_s0 + $0xf8] sm:$0xff] }
  0x82   : > { %521 = vadd.xlane.f32.xlu2 %v520_v20 }
  0x83   : > { %476 = vadd.xlane.f32.xlu1 %v475_v19  ;;  %v490_v19 = vsel %vm453_vm0, %v401_v9, 0.0 }
  0x84   : > { %473 = vadd.xlane.f32.xlu0 %v472_v21  ;;  %v433_v21 = vld [vmem:[%s2185_s0 + $0x160] sm:$0xff] }
  0x85   : > { %v586_v30 = vsel %vm453_vm0, %v433_v21, 0.0  ;;  %v547_v21 = vsel %vm453_vm0, %v420_v5, 0.0 }
  0x8a   : > { %572 = vadd.xlane.f32.xlu2 %v571_v26  ;;  %v418_v26 = vld [vmem:[%s2185_s0 + $0xe8] sm:$0xff] }
  0x8b   : > { %569 = vadd.xlane.f32.xlu1 %v568_v25 }
  0x8c   : > { %524 = vadd.xlane.f32.xlu0 %v523_v27 }
  0x92   : > { %479 = vadd.xlane.f32.xlu2 %v478_v32  ;;  %v541_v32 = vsel %vm453_vm0, %v418_v26, 0.0 }
  0x93   : > { %620 = vadd.xlane.f32.xlu1 %v619_v31  ;;  %v589_v31 = vsel %vm453_vm0, %v434_v22, 0.0 }
  0x94   : > { %617 = vadd.xlane.f32.xlu0 %v616_v33  ;;  %v1877_v33 = vand.u32 127, %v874_v23 }
  0x96   : > { %v1896_v52 = vadd.s32 4294967280, %v1877_v33  ;;  %v1899_v53 = vadd.s32 4294967272, %v1877_v33 }
  0x9a   : > { %530 = vadd.xlane.f32.xlu2 %v529_v38 }
  0x9b   : > { %527 = vadd.xlane.f32.xlu1 %v526_v37  ;;  %v1888_v37 = vadd.s32 4294967288, %v1877_v33 }
  0x9c   : > { %482 = vadd.xlane.f32.xlu0 %v481_v39 }
  0xa2   : > { %623 = vadd.xlane.f32.xlu2 %v622_v44 }
  0xa3   : > { %578 = vadd.xlane.f32.xlu1 %v577_v43  ;;  %v449_v43 = vld [vmem:[%s2185_s0 + $0x1e0] sm:$0xff] }
  0xa4   : > { %575 = vadd.xlane.f32.xlu0 %v574_v45 }
  0xaa   : > { %488 = vadd.xlane.f32.xlu2 %v487_v50  ;;  %v637_v50 = vsel %vm453_vm0, %v450_v35, 0.0 }
  0xab   : > { %485 = vadd.xlane.f32.xlu1 %v484_v49 }
  0xac   : > { %626 = vadd.xlane.f32.xlu0 %v625_v51  ;;  %v496_v51 = vsel %vm453_vm0, %v403_v36, 0.0 }
  0xb2   : > { %581 = vadd.xlane.f32.xlu2 %v580_v56 }
  0xb3   : > { %536 = vadd.xlane.f32.xlu1 %v535_v55  ;;  %v634_v55 = vsel %vm453_vm0, %v449_v43, 0.0 }
  0xb4   : > { %533 = vadd.xlane.f32.xlu0 %v532_v57 }
  0xb5   : > { %v552_v60 = vpop.xlane.xlu2 %551 }
  0xb6   : > { %v504_v61 = vpop.xlane.xlu1 %503  ;;  %v678_v3 = vmul.f32 0.020408163, %v552_v60 }
  0xb7   : > { %v456_v63 = vpop.xlane.xlu0 %455  ;;  %v662_v4 = vmul.f32 0.020408163, %v504_v61 }
  0xb8   : > { %v646_v13 = vmul.f32 0.020408163, %v456_v63 }
  0xba   : > { %632 = vadd.xlane.f32.xlu2 %v631_v1  ;;  %v419_v1 = vld [vmem:[%s2185_s0 + $0xf0] sm:$0xff] }
  0xbb   : > { %629 = vadd.xlane.f32.xlu1 %v628_v0 }
  0xbc   : > { %584 = vadd.xlane.f32.xlu0 %v583_v2 }
  0xbd   : > { %v555_v7 = vpop.xlane.xlu2 %554 }
  0xbe   : > { %v507_v8 = vpop.xlane.xlu1 %506  ;;  %v679_v10 = vmul.f32 0.020408163, %v555_v7 }
  0xbf   : > { %v663_v11 = vmul.f32 0.020408163, %v507_v8  ;;  %v459_v12 = vpop.xlane.xlu0 %458 }
  0xc0   : > { %v647_v14 = vmul.f32 0.020408163, %v459_v12  ;;  %v1862_v17 = vpack.c.bf16 %v679_v10, %v678_v3  ;;  %v404_v12 = vld [vmem:[%s2185_s0 + $0x78] sm:$0xff] }
  0xc1   : > { %v718_v18 = vpack.c.bf16 %v663_v11, %v662_v4  ;;  %v499_v23 = vsel %vm453_vm0, %v404_v12, 0.0 }
  0xc2   : > { %v710_v20 = vpack.c.bf16 %v647_v14, %v646_v13  ;;  %539 = vadd.xlane.f32.xlu2 %v538_v16  ;;  %v842_v2 = vunpack.c.l.b16 %v1862_v17  ;;  %v843_v6 = vunpack.c.h.b16 %v1862_v17  ;;  %v544_v17 = vsel %vm453_vm0, %v419_v1, 0.0 }
  0xc3   : > { %494 = vadd.xlane.f32.xlu1 %v493_v15  ;;  %v826_v38 = vunpack.c.l.b16 %v718_v18  ;;  %v827_v39 = vunpack.c.h.b16 %v718_v18 }
  0xc4   : > { %491 = vadd.xlane.f32.xlu0 %v490_v19  ;;  %v810_v44 = vunpack.c.l.b16 %v710_v20  ;;  %v811_v45 = vunpack.c.h.b16 %v710_v20 }
  0xc5   : > { %v462_v25 = vpop.xlane.xlu2 %461  ;;  %v937_v56 = vperm.slane %v826_v38, %v1877_v33  ;;  %v938_v57 = vperm.slane %v827_v39, %v1888_v37 }
  0xc6   : > { %v603_v24 = vpop.xlane.xlu1 %602  ;;  %v648_v40 = vmul.f32 0.020408163, %v462_v25  ;;  %v876_v59 = vperm.slane %v810_v44, %v1877_v33  ;;  %v878_v60 = vperm.slane %v811_v45, %v1888_v37  ;;  %v969_v25 = vperm.slane %v843_v6, %v1888_v37 }
  0xc7   : > { %v695_v27 = vmul.f32 0.020408163, %v603_v24  ;;  %v600_v28 = vpop.xlane.xlu0 %599  ;;  %v939_v7 = vsel %vm879_vm1, %v938_v57, %v937_v56  ;;  %v968_v24 = vperm.slane %v842_v2, %v1877_v33 }
  0xc8   : > { %v694_v29 = vmul.f32 0.020408163, %v600_v28  ;;  %v880_v13 = vsel %vm879_vm1, %v878_v60, %v876_v59 }
  0xca   : > { %v1879_v34 = vpack.c.bf16 %v695_v27, %v694_v29  ;;  %590 = vadd.xlane.f32.xlu2 %v589_v31  ;;  %v1935_v29 = vadd.s32 4294967264, %v1877_v33  ;;  %v451_v31 = vld [vmem:[%s2185_s0 + $0x1f0] sm:$0xff] }
  0xcb   : > { %587 = vadd.xlane.f32.xlu1 %v586_v30  ;;  %v436_v30 = vld [vmem:[%s2185_s0 + $0x178] sm:$0xff] }
  0xcc   : > { %542 = vadd.xlane.f32.xlu0 %v541_v32  ;;  %v970_v32 = vsel %vm879_vm1, %v969_v25, %v968_v24  ;;  %v859_v43 = vunpack.c.h.b16 %v1879_v34 }
  0xcd   : > { %v513_v42 = vpop.xlane.xlu2 %512 }
  0xce   : > { %v510_v41 = vpop.xlane.xlu1 %509  ;;  %v665_v47 = vmul.f32 0.020408163, %v513_v42  ;;  %v858_v42 = vunpack.c.l.b16 %v1879_v34 }
  0xcf   : > { %v664_v46 = vmul.f32 0.020408163, %v510_v41  ;;  %v465_v48 = vpop.xlane.xlu0 %464  ;;  %v435_v41 = vld [vmem:[%s2185_s0 + $0x170] sm:$0xff] }
  0xd0   : > { %v649_v49 = vmul.f32 0.020408163, %v465_v48  ;;  %v592_v56 = vsel %vm453_vm0, %v435_v41, 0.0  ;;  %v999_v34 = vperm.slane %v858_v42, %v1877_v33 }
  0xd1   : > { %v719_v54 = vpack.c.bf16 %v665_v47, %v664_v46 }
  0xd2   : > { %v711_v58 = vpack.c.bf16 %v649_v49, %v648_v40  ;;  %497 = vadd.xlane.f32.xlu2 %v496_v51  ;;  %v595_v49 = vsel %vm453_vm0, %v436_v30, 0.0 }
  0xd3   : > { %v828_v61 = vunpack.c.l.b16 %v719_v54  ;;  %v829_v62 = vunpack.c.h.b16 %v719_v54  ;;  %638 = vadd.xlane.f32.xlu1 %v637_v50  ;;  %v640_v50 = vsel %vm453_vm0, %v451_v31, 0.0  ;;  %v893_v54 = vadd.s32 4294967256, %v1877_v33 }
  0xd4   : > { %v812_v63 = vunpack.c.l.b16 %v711_v58  ;;  %v813_v0 = vunpack.c.h.b16 %v711_v58  ;;  %635 = vadd.xlane.f32.xlu0 %v634_v55  ;;  %v1000_v58 = vperm.slane %v859_v43, %v1888_v37  ;;  %v452_v37 = vld [vmem:[%s2185_s0 + $0x1f8] sm:$0xff] }
  0xd5   : > { %v940_v3 = vperm.slane %v828_v61, %v1896_v52  ;;  %v942_v4 = vperm.slane %v829_v62, %v1899_v53  ;;  %v606_v11 = vpop.xlane.xlu2 %605 }
  0xd6   : > { %v882_v8 = vperm.slane %v812_v63, %v1896_v52  ;;  %v886_v9 = vperm.slane %v813_v0, %v1899_v53  ;;  %v561_v10 = vpop.xlane.xlu1 %560  ;;  %v696_v35 = vmul.f32 0.020408163, %v606_v11  ;;  %v1001_v5 = vsel %vm879_vm1, %v1000_v58, %v999_v34 }
  0xd7   : > { %v941_v14 = vsel %vm883_vm2, %v940_v3, %v939_v7  ;;  %v681_v15 = vmul.f32 0.020408163, %v561_v10  ;;  %v558_v16 = vpop.xlane.xlu0 %557  ;;  %v643_v11 = vsel %vm453_vm0, %v452_v37, 0.0  ;;  %vm1030_vm0 = vcmask 1041409  }
  0xd8   : > { %v1926_v18 = vsel %vm887_vm3, %v942_v4, %v941_v14  ;;  %v884_v19 = vsel %vm883_vm2, %v882_v8, %v880_v13  ;;  %v680_v20 = vmul.f32 0.020408163, %v558_v16 }
  0xd9   : > { %v888_v22 = vsel %vm887_vm3, %v886_v9, %v884_v19 }
  0xda   : > { %v727_v26 = vpack.c.bf16 %v681_v15, %v680_v20  ;;  %548 = vadd.xlane.f32.xlu2 %v547_v21 }
  0xdb   : > { %545 = vadd.xlane.f32.xlu1 %v544_v17 }
  0xdc   : > { %v844_v27 = vunpack.c.l.b16 %v727_v26  ;;  %v845_v28 = vunpack.c.h.b16 %v727_v26  ;;  %500 = vadd.xlane.f32.xlu0 %v499_v23 }
  0xdd   : > { %v471_v40 = vpop.xlane.xlu2 %470 }
  0xde   : > { %v971_v36 = vperm.slane %v844_v27, %v1896_v52  ;;  %v973_v38 = vperm.slane %v845_v28, %v1899_v53  ;;  %v468_v39 = vpop.xlane.xlu1 %467  ;;  %v651_v45 = vmul.f32 0.020408163, %v471_v40 }
  0xdf   : > { %v650_v44 = vmul.f32 0.020408163, %v468_v39  ;;  %v609_v46 = vpop.xlane.xlu0 %608 }
  0xe0   : > { %v972_v47 = vsel %vm883_vm2, %v971_v36, %v970_v32  ;;  %v697_v48 = vmul.f32 0.020408163, %v609_v46 }
  0xe1   : > { %v1955_v51 = vsel %vm887_vm3, %v973_v38, %v972_v47  ;;  %v712_v55 = vpack.c.bf16 %v651_v45, %v650_v44 }
  0xe2   : > { %v735_v57 = vpack.c.bf16 %v697_v48, %v696_v35  ;;  %641 = vadd.xlane.f32.xlu2 %v640_v50  ;;  %v901_v50 = vadd.s32 4294967240, %v1877_v33 }
  0xe3   : > { %v814_v59 = vunpack.c.l.b16 %v712_v55  ;;  %v815_v60 = vunpack.c.h.b16 %v712_v55  ;;  %596 = vadd.xlane.f32.xlu1 %v595_v49  ;;  %v897_v49 = vadd.s32 4294967248, %v1877_v33 }
  0xe4   : > { %v860_v61 = vunpack.c.l.b16 %v735_v57  ;;  %v861_v62 = vunpack.c.h.b16 %v735_v57  ;;  %593 = vadd.xlane.f32.xlu0 %v592_v56 }
  0xe5   : > { %v890_v63 = vperm.slane %v814_v59, %v1935_v29  ;;  %v894_v0 = vperm.slane %v815_v60, %v893_v54  ;;  %v564_v4 = vpop.xlane.xlu2 %563 }
  0xe6   : > { %v1002_v1 = vperm.slane %v860_v61, %v1896_v52  ;;  %v1004_v2 = vperm.slane %v861_v62, %v1899_v53  ;;  %v519_v3 = vpop.xlane.xlu1 %518  ;;  %v682_v15 = vmul.f32 0.020408163, %v564_v4 }
  0xe7   : > { %v892_v6 = vsel %vm891_vm4, %v890_v63, %v888_v22  ;;  %v667_v7 = vmul.f32 0.020408163, %v519_v3  ;;  %v516_v8 = vpop.xlane.xlu0 %515 }
  0xe8   : > { %v896_v9 = vsel %vm895_vm5, %v894_v0, %v892_v6  ;;  %v1003_v10 = vsel %vm883_vm2, %v1002_v1, %v1001_v5  ;;  %v666_v52 = vmul.f32 0.020408163, %v516_v8 }
  0xe9   : > { %v1005_v53 = vsel %vm887_vm3, %v1004_v2, %v1003_v10 }
  0xea   : > { %v720_v12 = vpack.c.bf16 %v667_v7, %v666_v52 }
  0xec   : > { %v830_v13 = vunpack.c.l.b16 %v720_v12  ;;  %v831_v14 = vunpack.c.h.b16 %v720_v12  ;;  %644 = vadd.xlane.f32.xlu0 %v643_v11 }
  0xed   : > { %v615_v20 = vpop.xlane.xlu2 %614 }
  0xee   : > { %v944_v16 = vperm.slane %v830_v13, %v1935_v29  ;;  %v946_v17 = vperm.slane %v831_v14, %v893_v54  ;;  %v612_v19 = vpop.xlane.xlu1 %611  ;;  %v699_v22 = vmul.f32 0.020408163, %v615_v20 }
  0xef   : > { %v698_v21 = vmul.f32 0.020408163, %v612_v19  ;;  %v567_v23 = vpop.xlane.xlu0 %566 }
  0xf0   : > { %v945_v24 = vsel %vm891_vm4, %v944_v16, %v1926_v18  ;;  %v683_v25 = vmul.f32 0.020408163, %v567_v23 }
  0xf1   : > { %v947_v26 = vsel %vm895_vm5, %v946_v17, %v945_v24  ;;  %v736_v27 = vpack.c.bf16 %v699_v22, %v698_v21 }
  0xf2   : > { %v728_v28 = vpack.c.bf16 %v683_v25, %v682_v15 }
  0xf3   : > { %v862_v30 = vunpack.c.l.b16 %v736_v27  ;;  %v863_v31 = vunpack.c.h.b16 %v736_v27 }
  0xf4   : > { %v846_v32 = vunpack.c.l.b16 %v728_v28  ;;  %v847_v35 = vunpack.c.h.b16 %v728_v28 }
  0xf5   : > { %v1006_v36 = vperm.slane %v862_v30, %v1935_v29  ;;  %v1008_v38 = vperm.slane %v863_v31, %v893_v54  ;;  %v522_v41 = vpop.xlane.xlu2 %521 }
  0xf6   : > { %v975_v39 = vperm.slane %v846_v32, %v1935_v29  ;;  %v977_v40 = vperm.slane %v847_v35, %v893_v54  ;;  %v477_v18 = vpop.xlane.xlu1 %476  ;;  %v668_v56 = vmul.f32 0.020408163, %v522_v41 }
  0xf7   : > { %v1007_v42 = vsel %vm891_vm4, %v1006_v36, %v1005_v53  ;;  %v653_v43 = vmul.f32 0.020408163, %v477_v18  ;;  %v474_v44 = vpop.xlane.xlu0 %473  ;;  %v2010_v36 = vadd.s32 4294967224, %v1877_v33 }
  0xf8   : > { %v1009_v45 = vsel %vm895_vm5, %v1008_v38, %v1007_v42  ;;  %v976_v46 = vsel %vm891_vm4, %v975_v39, %v1955_v51  ;;  %v652_v47 = vmul.f32 0.020408163, %v474_v44 }
  0xf9   : > { %v978_v48 = vsel %vm895_vm5, %v977_v40, %v976_v46 }
  0xfa   : > { %v713_v29 = vpack.c.bf16 %v653_v43, %v652_v47 }
  0xfc   : > { %v816_v54 = vunpack.c.l.b16 %v713_v29  ;;  %v817_v55 = vunpack.c.h.b16 %v713_v29 }
  0xfd   : > { %v573_v59 = vpop.xlane.xlu2 %572 }
  0xfe   : > { %v898_v57 = vperm.slane %v816_v54, %v897_v49  ;;  %v902_v34 = vperm.slane %v817_v55, %v901_v50  ;;  %v570_v58 = vpop.xlane.xlu1 %569  ;;  %v685_v61 = vmul.f32 0.020408163, %v573_v59 }
  0xff   : > { %v684_v60 = vmul.f32 0.020408163, %v570_v58  ;;  %v525_v51 = vpop.xlane.xlu0 %524  ;;  %v1362_v58 = vld [vmem:[%s2028_s4 + $0x38] sm:$0xff] }
 0x100   : > { %v900_v62 = vsel %vm899_vm6, %v898_v57, %v896_v9  ;;  %v669_v63 = vmul.f32 0.020408163, %v525_v51  ;;  %1133 = vmatpush.bf16.msra.mxu0 %v1362_v58  ;;  %v1361_v51 = vld [vmem:[%s2028_s4 + $0x30] sm:$0xff] }
 0x101   : > { %v904_v0 = vsel %vm903_vm7, %v902_v34, %v900_v62  ;;  %v729_v1 = vpack.c.bf16 %v685_v61, %v684_v60  ;;  %v1360_v62 = vld [vmem:[%s2028_s4 + $0x28] sm:$0xff] }
 0x102   : > { %v721_v2 = vpack.c.bf16 %v669_v63, %v668_v56  ;;  %v1370_v63 = vld [vmem:[%s2028_s4 + $0x78] sm:$0xff] }
 0x103   : > { %v848_v3 = vunpack.c.l.b16 %v729_v1  ;;  %v849_v4 = vunpack.c.h.b16 %v729_v1  ;;  %1146 = vmatpush.bf16.msra.mxu1 %v1370_v63 }
 0x104   : > { %v832_v37 = vunpack.c.l.b16 %v721_v2  ;;  %v833_v5 = vunpack.c.h.b16 %v721_v2  ;;  %1134 = vmatpush.bf16.msra.mxu0 %v1361_v51  ;;  %v2065_v51 = vadd.s32 4294967200, %v1877_v33 }
 0x105   : > { %v979_v6 = vperm.slane %v848_v3, %v897_v49  ;;  %v981_v7 = vperm.slane %v849_v4, %v901_v50  ;;  %v480_v53 = vpop.xlane.xlu2 %479  ;;  %v1359_v3 = vld [vmem:[%s2028_s4 + $0x20] sm:$0xff]  ;;  %v1369_v4 = vld [vmem:[%s2028_s4 + $0x70] sm:$0xff] }
 0x106   : > { %v948_v8 = vperm.slane %v832_v37, %v897_v49  ;;  %v950_v10 = vperm.slane %v833_v5, %v901_v50  ;;  %v621_v52 = vpop.xlane.xlu1 %620  ;;  %v654_v21 = vmul.f32 0.020408163, %v480_v53  ;;  %v1358_v37 = vld [vmem:[%s2028_s4 + $0x18] sm:$0xff]  ;;  %v1368_v5 = vld [vmem:[%s2028_s4 + $0x68] sm:$0xff] }
 0x107   : > { %v980_v11 = vsel %vm899_vm6, %v979_v6, %v978_v48  ;;  %v701_v12 = vmul.f32 0.020408163, %v621_v52  ;;  %v618_v13 = vpop.xlane.xlu0 %617  ;;  %1147 = vmatpush.bf16.msra.mxu1 %v1369_v4  ;;  %v1367_v52 = vld [vmem:[%s2028_s4 + $0x60] sm:$0xff] }
 0x108   : > { %v1998_v9 = vsel %vm903_vm7, %v981_v7, %v980_v11  ;;  %v949_v14 = vsel %vm899_vm6, %v948_v8, %v947_v26  ;;  %v700_v15 = vmul.f32 0.020408163, %v618_v13  ;;  %v2007_v26 = vadd.s32 4294967232, %v1877_v33  ;;  %1135 = vmatpush.bf16.msra.mxu0 %v1360_v62  ;;  %v1356_v13 = vld [vmem:[%s2028_s4 + $0x8] sm:$0xff] }
 0x109   : > { %v951_v16 = vsel %vm903_vm7, %v950_v10, %v949_v14  ;;  %v1357_v10 = vld [vmem:[%s2028_s4 + $0x10] sm:$0xff]  ;;  %v1366_v14 = vld [vmem:[%s2028_s4 + $0x58] sm:$0xff] }
 0x10a   : > { %v737_v17 = vpack.c.bf16 %v701_v12, %v700_v15 }
 0x10b   : > { %1148 = vmatpush.bf16.msra.mxu1 %v1368_v5 }
 0x10c   : > { %v864_v19 = vunpack.c.l.b16 %v737_v17  ;;  %v865_v20 = vunpack.c.h.b16 %v737_v17  ;;  %1136 = vmatpush.bf16.msra.mxu0 %v1359_v3 }
 0x10d   : > { %v531_v25 = vpop.xlane.xlu2 %530 }
 0x10e   : > { %v1010_v22 = vperm.slane %v864_v19, %v897_v49  ;;  %v1012_v23 = vperm.slane %v865_v20, %v901_v50  ;;  %v528_v24 = vpop.xlane.xlu1 %527  ;;  %v671_v28 = vmul.f32 0.020408163, %v531_v25 }
 0x10f   : > { %v670_v27 = vmul.f32 0.020408163, %v528_v24  ;;  %v483_v30 = vpop.xlane.xlu0 %482  ;;  %1149 = vmatpush.bf16.msra.mxu1 %v1367_v52  ;;  %v1365_v24 = vld [vmem:[%s2028_s4 + $0x50] sm:$0xff] }
 0x110   : > { %v1011_v31 = vsel %vm899_vm6, %v1010_v22, %v1009_v45  ;;  %v655_v32 = vmul.f32 0.020408163, %v483_v30  ;;  %1137 = vmatpush.bf16.msra.mxu0 %v1358_v37 }
 0x111   : > { %v2004_v35 = vsel %vm903_vm7, %v1012_v23, %v1011_v31  ;;  %v722_v38 = vpack.c.bf16 %v671_v28, %v670_v27  ;;  %v1355_v23 = vld [vmem:[%s2028_s4] sm:$0xff] }
 0x112   : > { %v714_v39 = vpack.c.bf16 %v655_v32, %v654_v21  ;;  %v1364_v32 = vld [vmem:[%s2028_s4 + $0x48] sm:$0xff] }
 0x113   : > { %v834_v40 = vunpack.c.l.b16 %v722_v38  ;;  %v835_v18 = vunpack.c.h.b16 %v722_v38  ;;  %1150 = vmatpush.bf16.msra.mxu1 %v1366_v14  ;;  %v2054_v38 = vadd.s32 4294967216, %v1877_v33 }
 0x114   : > { %v818_v41 = vunpack.c.l.b16 %v714_v39  ;;  %v819_v42 = vunpack.c.h.b16 %v714_v39  ;;  %1138 = vmatpush.bf16.msra.mxu0 %v1357_v10 }
 0x115   : > { %v952_v43 = vperm.slane %v834_v40, %v2007_v26  ;;  %v954_v44 = vperm.slane %v835_v18, %v2010_v36  ;;  %v624_v48 = vpop.xlane.xlu2 %623 }
 0x116   : > { %v906_v45 = vperm.slane %v818_v41, %v2007_v26  ;;  %v910_v46 = vperm.slane %v819_v42, %v2010_v36  ;;  %v579_v47 = vpop.xlane.xlu1 %578  ;;  %v702_v11 = vmul.f32 0.020408163, %v624_v48  ;;  %v1363_v41 = vld [vmem:[%s2028_s4 + $0x40] sm:$0xff]  ;;  %v2059_v48 = vadd.s32 4294967208, %v1877_v33 }
 0x117   : > { %v953_v49 = vsel %vm907_vm8, %v952_v43, %v951_v16  ;;  %v576_v50 = vpop.xlane.xlu0 %575  ;;  %v687_v53 = vmul.f32 0.020408163, %v579_v47  ;;  %1151 = vmatpush.bf16.msra.mxu1 %v1365_v24 }
 0x118   : > { %v2018_v29 = vsel %vm911_vm9, %v954_v44, %v953_v49  ;;  %v908_v54 = vsel %vm907_vm8, %v906_v45, %v904_v0  ;;  %v686_v12 = vmul.f32 0.020408163, %v576_v50  ;;  %1139 = vmatpush.bf16.msra.mxu0 %v1356_v13 }
 0x119   : > { %v2022_v55 = vsel %vm911_vm9, %v910_v46, %v908_v54 }
 0x11a   : > { %v730_v22 = vpack.c.bf16 %v687_v53, %v686_v12  ;;  %v2079_v12 = vadd.s32 4294967192, %v1877_v33 }
 0x11b   : > { %1152 = vmatpush.bf16.msra.mxu1 %v1364_v32 }
 0x11c   : > { %1140 = vmatpush.bf16.msra.mxu0 %v1355_v23  ;;  %v850_v31 = vunpack.c.l.b16 %v730_v22  ;;  %v851_v42 = vunpack.c.h.b16 %v730_v22 }
 0x11d   : > { %v489_v57 = vpop.xlane.xlu2 %488 }
 0x11e   : > { %v486_v56 = vpop.xlane.xlu1 %485  ;;  %v657_v16 = vmul.f32 0.020408163, %v489_v57  ;;  %v983_v47 = vperm.slane %v850_v31, %v2007_v26 }
 0x11f   : > { %v627_v34 = vpop.xlane.xlu0 %626  ;;  %v656_v15 = vmul.f32 0.020408163, %v486_v56  ;;  %1153 = vmatpush.bf16.msra.mxu1 %v1363_v41 }
 0x120   : > { %v703_v17 = vmul.f32 0.020408163, %v627_v34  ;;  %v984_v62 = vsel %vm907_vm8, %v983_v47, %v1998_v9 }
 0x121   : > { %v715_v25 = vpack.c.bf16 %v657_v16, %v656_v15 }
 0x122   : > { %v738_v27 = vpack.c.bf16 %v703_v17, %v702_v11 }
 0x123   : > { %v820_v39 = vunpack.c.l.b16 %v715_v25  ;;  %v821_v56 = vunpack.c.h.b16 %v715_v25 }
 0x124   : > { %v866_v40 = vunpack.c.l.b16 %v738_v27  ;;  %v867_v34 = vunpack.c.h.b16 %v738_v27 }
 0x125   : > { %v582_v60 = vpop.xlane.xlu2 %581  ;;  %v914_v57 = vperm.slane %v820_v39, %v2054_v38 }
 0x126   : > { %v537_v59 = vpop.xlane.xlu1 %536  ;;  %v688_v43 = vmul.f32 0.020408163, %v582_v60  ;;  %v1014_v58 = vperm.slane %v866_v40, %v2007_v26  ;;  %v918_v26 = vperm.slane %v821_v56, %v2059_v48  ;;  %v1016_v5 = vperm.slane %v867_v34, %v2010_v36 }
 0x127   : > { %v534_v61 = vpop.xlane.xlu0 %533  ;;  %v673_v28 = vmul.f32 0.020408163, %v537_v59  ;;  %v985_v59 = vperm.slane %v851_v42, %v2010_v36  ;;  %v916_v4 = vsel %vm915_vm10, %v914_v57, %v2022_v55  ;;  %v2097_v40 = vadd.s32 4294967176, %v1877_v33 }
 0x128   : > { %v672_v30 = vmul.f32 0.020408163, %v534_v61  ;;  %v1015_v37 = vsel %vm907_vm8, %v1014_v58, %v2004_v35 }
 0x129   : > { %v986_v13 = vsel %vm911_vm9, %v985_v59, %v984_v62 }
 0x12a   : > { %v723_v44 = vpack.c.bf16 %v673_v28, %v672_v30  ;;  %v2093_v28 = vadd.s32 4294967184, %v1877_v33 }
 0x12c   : > { %v836_v60 = vunpack.c.l.b16 %v723_v44 }
 0x12d   : > { %v2036_v1 = vpop.xlane.xlu2 %632 }
 0x12e   : > { %v2034_v0 = vpop.xlane.xlu1 %629  ;;  %v705_v10 = vmul.f32 0.020408163, %v2036_v1  ;;  %v956_v53 = vperm.slane %v836_v60, %v2054_v38  ;;  %v2084_v1 = vsel %vm911_vm9, %v1016_v5, %v1015_v37 }
 0x12f   : > { %v585_v2 = vpop.xlane.xlu0 %584 }
 0x130   : > { %v689_v45 = vmul.f32 0.020408163, %v585_v2  ;;  %v957_v24 = vsel %vm915_vm10, %v956_v53, %v2018_v29 }
 0x132   : > { %v731_v61 = vpack.c.bf16 %v689_v45, %v688_v43 }
 0x134   : > { %v852_v11 = vunpack.c.l.b16 %v731_v61 }
 0x135   : > { %v2042_v7 = vpop.xlane.xlu2 %539 }
 0x136   : > { %v495_v6 = vpop.xlane.xlu1 %494  ;;  %v674_v15 = vmul.f32 0.020408163, %v2042_v7  ;;  %v987_v25 = vperm.slane %v852_v11, %v2054_v38 }
 0x137   : > { %v492_v8 = vpop.xlane.xlu0 %491  ;;  %v659_v49 = vmul.f32 0.020408163, %v495_v6  ;;  %v837_v6 = vunpack.c.h.b16 %v723_v44 }
 0x138   : > { %v658_v50 = vmul.f32 0.020408163, %v492_v8  ;;  %v704_v8 = vmul.f32 0.020408163, %v2034_v0  ;;  %v920_v0 = vsel %vm919_vm11, %v918_v26, %v916_v4  ;;  %v988_v47 = vsel %vm915_vm10, %v987_v25, %v986_v13 }
 0x139   : > { %v958_v17 = vperm.slane %v837_v6, %v2059_v48 }
 0x13a   : > { %v716_v63 = vpack.c.bf16 %v659_v49, %v658_v50 }
 0x13b   : > { %v959_v42 = vsel %vm919_vm11, %v958_v17, %v957_v24 }
 0x13c   : > { %v822_v35 = vunpack.c.l.b16 %v716_v63  ;;  %v823_v27 = vunpack.c.h.b16 %v716_v63 }
 0x13d   : > { %v591_v20 = vpop.xlane.xlu2 %590 }
 0x13e   : > { %v588_v19 = vpop.xlane.xlu1 %587  ;;  %v691_v3 = vmul.f32 0.020408163, %v591_v20  ;;  %v853_v20 = vunpack.c.h.b16 %v731_v61  ;;  %v922_v30 = vperm.slane %v822_v35, %v2065_v51  ;;  %v926_v49 = vperm.slane %v823_v27, %v2079_v12 }
 0x13f   : > { %v2048_v21 = vpop.xlane.xlu0 %542  ;;  %v690_v2 = vmul.f32 0.020408163, %v588_v19  ;;  %v739_v19 = vpack.c.bf16 %v705_v10, %v704_v8 }
 0x140   : > { %v675_v16 = vmul.f32 0.020408163, %v2048_v21  ;;  %v989_v43 = vperm.slane %v853_v20, %v2059_v48  ;;  %v924_v57 = vsel %vm923_vm12, %v922_v30, %v920_v0 }
 0x141   : > { %v732_v14 = vpack.c.bf16 %v691_v3, %v690_v2  ;;  %v868_v29 = vunpack.c.l.b16 %v739_v19  ;;  %v869_v34 = vunpack.c.h.b16 %v739_v19  ;;  %v928_v26 = vsel %vm927_vm13, %v926_v49, %v924_v57 }
 0x142   : > { %v724_v32 = vpack.c.bf16 %v675_v16, %v674_v15  ;;  %v990_v2 = vsel %vm919_vm11, %v989_v43, %v988_v47 }
 0x143   : > { %v854_v7 = vunpack.c.l.b16 %v732_v14  ;;  %v855_v50 = vunpack.c.h.b16 %v732_v14  ;;  %v1018_v61 = vperm.slane %v868_v29, %v2054_v38  ;;  %v1020_v35 = vperm.slane %v869_v34, %v2059_v48 }
 0x144   : > { %v838_v58 = vunpack.c.l.b16 %v724_v32  ;;  %v839_v10 = vunpack.c.h.b16 %v724_v32 }
 0x145   : > { %v498_v54 = vpop.xlane.xlu2 %497  ;;  %v993_v3 = vperm.slane %v855_v50, %v2079_v12  ;;  %v1019_v15 = vsel %vm915_vm10, %v1018_v61, %v2084_v1 }
 0x146   : > { %v639_v18 = vpop.xlane.xlu1 %638  ;;  %v660_v52 = vmul.f32 0.020408163, %v498_v54  ;;  %v991_v54 = vperm.slane %v854_v7, %v2065_v51  ;;  %v960_v38 = vperm.slane %v838_v58, %v2065_v51  ;;  %v962_v20 = vperm.slane %v839_v10, %v2079_v12 }
 0x147   : > { %v636_v46 = vpop.xlane.xlu0 %635  ;;  %v707_v31 = vmul.f32 0.020408163, %v639_v18  ;;  %v1021_v1 = vsel %vm919_vm11, %v1020_v35, %v1019_v15 }
 0x148   : > { %v706_v21 = vmul.f32 0.020408163, %v636_v46  ;;  %v992_v8 = vsel %vm923_vm12, %v991_v54, %v990_v2  ;;  %v961_v30 = vsel %vm923_vm12, %v960_v38, %v959_v42 }
 0x149   : > { %v994_v0 = vsel %vm927_vm13, %v993_v3, %v992_v8 }
 0x14a   : > { %v740_v56 = vpack.c.bf16 %v707_v31, %v706_v21 }
 0x14c   : > { %v870_v37 = vunpack.c.l.b16 %v740_v56  ;;  %v871_v14 = vunpack.c.h.b16 %v740_v56 }
 0x14d   : > { %v549_v22 = vpop.xlane.xlu2 %548 }
 0x14e   : > { %v546_v9 = vpop.xlane.xlu1 %545  ;;  %v677_v41 = vmul.f32 0.020408163, %v549_v22  ;;  %v1022_v16 = vperm.slane %v870_v37, %v2065_v51  ;;  %v1024_v51 = vperm.slane %v871_v14, %v2079_v12 }
 0x14f   : > { %v501_v55 = vpop.xlane.xlu0 %500  ;;  %v676_v39 = vmul.f32 0.020408163, %v546_v9 }
 0x150   : > { %v661_v36 = vmul.f32 0.020408163, %v501_v55  ;;  %v1023_v32 = vsel %vm923_vm12, %v1022_v16, %v1021_v1 }
 0x151   : > { %v725_v59 = vpack.c.bf16 %v677_v41, %v676_v39  ;;  %v963_v41 = vsel %vm927_vm13, %v962_v20, %v961_v30  ;;  %v1025_v12 = vsel %vm927_vm13, %v1024_v51, %v1023_v32 }
 0x152   : > { %v717_v23 = vpack.c.bf16 %v661_v36, %v660_v52 }
 0x153   : > { %v840_v52 = vunpack.c.l.b16 %v725_v59  ;;  %v841_v22 = vunpack.c.h.b16 %v725_v59 }
 0x154   : > { %v824_v44 = vunpack.c.l.b16 %v717_v23  ;;  %v825_v60 = vunpack.c.h.b16 %v717_v23 }
 0x155   : > { %v642_v4 = vpop.xlane.xlu2 %641  ;;  %v964_v24 = vperm.slane %v840_v52, %v2093_v28  ;;  %v966_v39 = vperm.slane %v841_v22, %v2097_v40 }
 0x156   : > { %v597_v45 = vpop.xlane.xlu1 %596  ;;  %v930_v62 = vperm.slane %v824_v44, %v2093_v28  ;;  %v934_v9 = vperm.slane %v825_v60, %v2097_v40  ;;  %v708_v55 = vmul.f32 0.020408163, %v642_v4 }
 0x157   : > { %v693_v18 = vmul.f32 0.020408163, %v597_v45  ;;  %v594_v46 = vpop.xlane.xlu0 %593  ;;  %v965_v43 = vsel %vm931_vm14, %v964_v24, %v963_v41 }
 0x158   : > { %v692_v33 = vmul.f32 0.020408163, %v594_v46  ;;  %v932_v13 = vsel %vm931_vm14, %v930_v62, %v928_v26  ;;  %v967_v45 = vsel %vm935_vm15, %v966_v39, %v965_v43 }
 0x159   : > { %v936_v23 = vsel %vm935_vm15, %v934_v9, %v932_v13 }
 0x15a   : > { %v733_v63 = vpack.c.bf16 %v693_v18, %v692_v33 }
 0x15c   : > { %v856_v5 = vunpack.c.l.b16 %v733_v63  ;;  %v857_v6 = vunpack.c.h.b16 %v733_v63 }
 0x15e   : > { %v995_v53 = vperm.slane %v856_v5, %v2093_v28  ;;  %v997_v11 = vperm.slane %v857_v6, %v2097_v40 }
 0x15f   : > { %v645_v36 = vpop.xlane.xlu0 %644 }
 0x160   : > { %v709_v17 = vmul.f32 0.020408163, %v645_v36  ;;  %v996_v19 = vsel %vm931_vm14, %v995_v53, %v994_v0 }
 0x161   : > { %v998_v48 = vsel %vm935_vm15, %v997_v11, %v996_v19 }
 0x162   : > { %v741_v25 = vpack.c.bf16 %v709_v17, %v708_v55  ;;  %v1031_v27 = vsel %vm1030_vm0, %v998_v48, %v936_v23 }
 0x163   : > { %v1033_v7 = vpack.c.b16 %v1031_v27, %v1031_v27 }
 0x164   : > { %v872_v31 = vunpack.c.l.b16 %v741_v25  ;;  %v873_v21 = vunpack.c.h.b16 %v741_v25 }
 0x165   : > { %1141 = vmatmul.bf16.vlgmr.msra.gmra.mxu0 %v1033_v7 }
 0x166   : > { %v1026_v29 = vperm.slane %v872_v31, %v2093_v28  ;;  %v1028_v42 = vperm.slane %v873_v21, %v2097_v40  ;;  %v1426_v28 = vld [vmem:[%s388_s28] ss:$0 sm:$0xff] }
 0x168   : > { %v1027_v44 = vsel %vm931_vm14, %v1026_v29, %v1025_v12 }
 0x169   : > { %v1029_v47 = vsel %vm935_vm15, %v1028_v42, %v1027_v44 }
 0x16a   : > { %v1032_v49 = vsel %vm1030_vm0, %v1029_v47, %v967_v45 }
 0x16b   : > { %v1034_v50 = vpack.c.b16 %v1032_v49, %v1032_v49 }
 0x16d   : > { %1154 = vmatmul.bf16.vlgmr.msra.gmra.mxu1 %v1034_v50 }
 0x1e2   : > { %v1142_v18 = vpop.f32.mrf.mxu0 }
 0x1e3   : > { %v1143_v40 = vadd.f32 %v1426_v28, %v1142_v18 }
 0x1ea   : > { %v1144_v46 = vpop.f32.mrf.mxu0  ;;  %v1155_v54 = vpop.f32.mrf.mxu1 }
 0x1eb   : > { %v1156_v56 = vadd.f32 %v1155_v54, %v1143_v40 }
 0x1ed   : > { %1159 = vst [vmem:[%s378_s18] sm:$0x3] %v1156_v56 }
 0x1ee   : > { %1454 = shalt.err (!%p1451_p8)
}
 0x1ef   : > { %1371 = dma.vmem_to_hbm [thread:$0]  (%p1566_p5), %s1176_s19, 32, %s1178_s21, %s1161_s15  }
 0x1f2   : > { %v1157_v33 = vpop.f32.mrf.mxu1 }
 0x1f3 PF: > { %s1189_s29 = sand.u32 1, %s1485_s12   ;;  %p1374_p11 = pnand %p1281_p10, %p1577_p9 }
 0x1f4   : > { %s1190_s6 = scalar_lea.sflag [#allocation4], %s1189_s29 }
 0x1f5   : > { %p1375_p12 = pneg %p1374_p11 }
 0x1f7   : > { %1480 = dma.done.wait (%p1375_p12), %s1190_s6, 32  }
 0x1f8   : > { %1482 = vsyncadd (%p1375_p12), %s1190_s6, 4294967264  ;;  %s16_s17 = sadd.s32 1, %s1505_s17   ;;  %s2191_s12 = smov %s1489_s13 }
 0x1f9   : > { %p13_p13 = scmp.ge.s32.totalorder %s16_s17, 4   ;;  %s2192_s13 = smov %s1493_s14 }
 0x1fa   : > { %s2193_s14 = smov %s1575_s24  ;;  %s2194_s15 = smov %s1501_s16 }
 0x1fb   : > { %s2195_s16 = smov %s2197_s20  ;;  %15 = sbr.rel (!%p13_p13) target bundleno = 4 (0x4), region = 119 }
 0x200   :  { %1196 = vsyncpa [#allocation4], 1 }
 0x201   :  { %1198 = vsyncpa [#allocation4 + $0x1], 1 }

</bundles_post_ra>
